<compile_context>
chip_gen: v7x
topology: tpu7x:2x2x1
jax: 0.10.0
libtpu: 0.0.40
codegen_flags: <defaults>
</compile_context>

<pallas_src>
import functools

import jax
import jax.numpy as jnp
from jax import lax
from jax.experimental import pallas as pl
from jax.experimental.pallas import tpu as pltpu


def _atloss_kernel(logits_ref, labels_ref, partial_ref, acc_ref, *,
                   n_total, row_tile, tiles_per_core):
    """Accumulate per-row (loss1 + loss2) into a persistent VMEM scratch."""
    p = pl.program_id(0)          # parallel (core) split index
    j = pl.program_id(1)          # row-tile index within this core (reduction)
    nj = pl.num_programs(1)

    @pl.when(j == 0)
    def _init():
        acc_ref[...] = jnp.zeros_like(acc_ref)

    logits = logits_ref[...].astype(jnp.float32)     # (TN, C) f32
    labels_raw = labels_ref[...]                     # (TN, C) native dtype
    tn, c = logits.shape

    # Column-0 mask as a (1, C) row, broadcast over rows.
    is_col0 = lax.broadcasted_iota(jnp.int32, (1, c), 1) == 0
    # Positive classes: nonzero label outside column 0 (native-dtype compare,
    # i.e. labels[:, 0] is implicitly zeroed as in the PyTorch forward).
    pos = jnp.logical_and(labels_raw != 0, jnp.logical_not(is_col0))
    labels0 = jnp.where(pos, labels_raw.astype(jnp.float32), 0.0)  # (TN, C)

    # Shared row-max / single-exp restructure of both restricted softmaxes.
    m = jnp.max(logits, axis=1, keepdims=True)                     # (TN, 1)
    e = jnp.exp(logits - m)                                        # (TN, C)
    e0 = e[:, 0:1]                                                 # class 0
    s_pos = jnp.sum(jnp.where(pos, e, 0.0), axis=1, keepdims=True)
    s_neg0 = jnp.sum(jnp.where(pos, 0.0, e), axis=1, keepdims=True)  # negatives ∪ class 0
    tiny = jnp.float32(1e-30)   # guard: fully-underflowed restricted set
    lse1 = m + jnp.log(jnp.maximum(s_pos + e0, tiny))   # over {pos ∪ class 0}
    lse2 = m + jnp.log(jnp.maximum(s_neg0, tiny))       # over {neg ∪ class 0}

    # loss1 = -sum_pos labels * log_softmax_restricted = sum labels0*(lse1 - logits)
    loss1_row = jnp.sum(labels0 * (lse1 - logits), axis=1, keepdims=True)  # (TN,1)
    # loss2 = -(log_softmax_restricted)[class 0] = lse2 - logits[:, 0]
    loss2_row = lse2 - logits[:, 0:1]                                      # (TN,1)

    # Mask rows past the true N (partial last tile / clamped overflow tile of
    # the core split) BEFORE any cross-row reduction; padded rows may hold
    # garbage (NaN/inf) logits.
    tile_idx = p * tiles_per_core + j
    row = lax.broadcasted_iota(jnp.int32, (tn, 1), 0) + tile_idx * row_tile
    per_row = jnp.where(row < n_total, loss1_row + loss2_row, 0.0)
    acc_ref[...] += per_row

    @pl.when(j == nj - 1)
    def _finalize():
        partial_ref[...] = jnp.sum(acc_ref[...], axis=0, keepdims=True)  # (1,1)


def _pick_row_tile(n, c):
    # Size against the in-kernel f32 working set (inputs are upcast inside
    # the kernel): ~1 MiB per (TN, C) f32 block.  With ~6 live full-tile f32
    # temporaries plus 2 inputs x 2 pipeline buffers in their native dtype
    # and the (TN, 1) accumulator scratch, the total stays well under the
    # 32 MiB scoped-VMEM limit (v7x: 64 MiB physical), while >=512-row blocks
    # already sit near the HBM roofline.
    budget = 1 * 1024 * 1024
    tile = budget // max(1, c * 4)
    tile = min(tile, 8192)                    # bound the (TN, 1) scratch too
    tile = max(32, (tile // 32) * 32)         # lcm of f32/bf16/int8 packing
    return n if tile >= n else tile


def _default_num_cores():
    # Only v7x-class parts have 2 TensorCores per chip; on single-TC chips
    # (v5e / v6e) a second "parallel" axis just adds a wasted clamped
    # overflow tile and splits the reduction loop.
    try:
        kind = jax.devices()[0].device_kind.lower()
    except Exception:
        return 1
    return 2 if "v7" in kind else 1


def atloss(logits, labels, *, row_tile=None, num_cores=None):
    """Pallas-TPU forward of ATLoss: mean over rows of (loss1 + loss2)."""
    n, c = logits.shape
    if row_tile is None:
        row_tile = _pick_row_tile(n, c)
    if row_tile >= n:
        row_tile = n                              # full-extent block: any N allowed
    else:
        row_tile = max(32, (row_tile // 32) * 32)  # sublane-packing-friendly
        if row_tile >= n:
            row_tile = n

    num_tiles = pl.cdiv(n, row_tile)
    if num_cores is None:
        num_cores = _default_num_cores()
    num_cores = max(1, min(num_cores, num_tiles))
    tiles_per_core = pl.cdiv(num_tiles, num_cores)

    def in_index_map(p, j):
        t = p * tiles_per_core + j
        # Clamp the overflow tile of the core split; its rows are masked
        # inside the kernel (nominal global row >= N), so no double counting.
        return (jnp.minimum(t, num_tiles - 1), 0)

    kernel = functools.partial(
        _atloss_kernel,
        n_total=n,
        row_tile=row_tile,
        tiles_per_core=tiles_per_core,
    )

    partials = pl.pallas_call(
        kernel,
        out_shape=jax.ShapeDtypeStruct((num_cores, 1), jnp.float32),
        grid=(num_cores, tiles_per_core),
        in_specs=[
            pl.BlockSpec((row_tile, c), in_index_map),
            pl.BlockSpec((row_tile, c), in_index_map),
        ],
        out_specs=pl.BlockSpec((1, 1), lambda p, j: (p, 0)),
        scratch_shapes=[pltpu.VMEM((row_tile, 1), jnp.float32)],
        compiler_params=pltpu.CompilerParams(
            dimension_semantics=("parallel", "arbitrary"),
            vmem_limit_bytes=32 * 1024 * 1024,
        ),
    )(logits, labels)

    # Global mean: sum of per-core partial sums divided by the global N.
    return jnp.sum(partials) / jnp.float32(n)


def atloss_reference(logits, labels):
    """Pure-JAX reference mirroring the PyTorch ATLoss.forward exactly."""
    logits = logits.astype(jnp.float32)
    labels = labels.astype(jnp.float32)
    th_label = jnp.zeros_like(labels).at[:, 0].set(1.0)
    labels = labels.at[:, 0].set(0.0)
    p_mask = labels + th_label
    n_mask = 1.0 - labels
    logit1 = logits - (1.0 - p_mask) * 1e30
    loss1 = -(jax.nn.log_softmax(logit1, axis=-1) * labels).sum(axis=1)
    logit2 = logits - (1.0 - n_mask) * 1e30
    loss2 = -(jax.nn.log_softmax(logit2, axis=-1) * th_label).sum(axis=1)
    return (loss1 + loss2).mean()


# TODO(synk): ATLoss.get_label / get_score (inference-time helpers with topk)
# are not part of the forward pass and are not implemented as kernels.


if __name__ == "__main__":
    key = jax.random.PRNGKey(0)
    k1, k2, k3 = jax.random.split(key, 3)

    # f32 case: N=72 with row_tile=32 exercises multi-tile pipelining, a
    # partial last tile, and (on 2-TC parts) a clamped + fully-masked
    # overflow tile of the parallel core split.
    N, C = 72, 32
    logits = jax.random.normal(k1, (N, C), dtype=jnp.float32) * 2.0
    labels = (jax.random.uniform(k2, (N, C)) < 0.3).astype(jnp.float32)

    loss = atloss(logits, labels, row_tile=32)
    jax.block_until_ready(loss)
    ref = atloss_reference(logits, labels)
    assert jnp.allclose(loss, ref, rtol=1e-4, atol=1e-4), (loss, ref)

    # bf16 logits: exercises the in-kernel f32 upcast path and the
    # auto-picked (full-extent) tile.
    logits_bf16 = (jax.random.normal(k3, (N, C), dtype=jnp.float32) * 2.0
                   ).astype(jnp.bfloat16)
    loss_b = atloss(logits_bf16, labels)
    jax.block_until_ready(loss_b)
    ref_b = atloss_reference(logits_bf16, labels)
    assert jnp.allclose(loss_b, ref_b, rtol=2e-3, atol=2e-3), (loss_b, ref_b)

    print("KERNEL_OK")
</pallas_src>

<mosaic_0001>
module attributes {stable_mosaic.version = 11 : i64} {
  func.func @_atloss_kernel(%arg0: i32, %arg1: i32, %arg2: memref<32x32xf32, #tpu.memory_space<vmem>>, %arg3: memref<32x32xf32, #tpu.memory_space<vmem>>, %arg4: memref<1x1xf32, #tpu.memory_space<vmem>>, %arg5: memref<32x1xf32, #tpu.memory_space<vmem>>) attributes {dimension_semantics = [#tpu.dimension_semantics<parallel>, #tpu.dimension_semantics<arbitrary>], iteration_bounds = array<i64: 1, 3>, scalar_prefetch = 0 : i64, scratch_operands = 1 : i64, tpu.core_type = #tpu.core_type<tc>, window_params = [{transform_indices = @transform_0, window_bounds = array<i64: 32, 32>}, {transform_indices = @transform_1, window_bounds = array<i64: 32, 32>}, {transform_indices = @transform_2, window_bounds = array<i64: 1, 1>}]} {
    %c0_i32 = arith.constant 0 : i32
    %0 = arith.cmpi eq, %arg1, %c0_i32 : i32
    %1 = arith.extui %0 : i1 to i32
    %c0_i32_0 = arith.constant 0 : i32
    %2 = arith.cmpi ne, %1, %c0_i32_0 : i32
    scf.if %2 {
      %cst_21 = arith.constant 0.000000e+00 : f32
      %62 = vector.broadcast %cst_21 : f32 to vector<32x1xf32>
      %c0_22 = arith.constant 0 : index
      %c0_23 = arith.constant 0 : index
      %63 = vector.load %arg5[%c0_22, %c0_23] : memref<32x1xf32, #tpu.memory_space<vmem>>, vector<32x1xf32>
      tpu.vector_store %arg5[%c0_22, %c0_23], %62 {strides = array<i32>} : memref<32x1xf32, #tpu.memory_space<vmem>>, vector<32x1xf32>,
    } else {
    }
    %c0 = arith.constant 0 : index
    %c0_1 = arith.constant 0 : index
    %3 = vector.load %arg2[%c0, %c0_1] : memref<32x32xf32, #tpu.memory_space<vmem>>, vector<32x32xf32>
    %c0_2 = arith.constant 0 : index
    %c0_3 = arith.constant 0 : index
    %4 = vector.load %arg3[%c0_2, %c0_3] : memref<32x32xf32, #tpu.memory_space<vmem>>, vector<32x32xf32>
    %5 = tpu.iota {dimensions = array<i32: 1>} : vector<1x32xi32>
    %c0_i32_4 = arith.constant 0 : i32
    %6 = vector.broadcast %c0_i32_4 : i32 to vector<1x32xi32>
    %7 = arith.cmpi eq, %5, %6 : vector<1x32xi32>
    %cst = arith.constant 0.000000e+00 : f32
    %8 = vector.broadcast %cst : f32 to vector<32x32xf32>
    %9 = arith.cmpf one, %4, %8 : vector<32x32xf32>
    %cst_5 = arith.constant dense<true> : vector<1x32xi1>
    %10 = arith.xori %7, %cst_5 : vector<1x32xi1>
    %11 = vector.broadcast %10 : vector<1x32xi1> to vector<32x32xi1>
    %12 = arith.andi %9, %11 : vector<32x32xi1>
    %cst_6 = arith.constant 0.000000e+00 : f32
    %13 = vector.broadcast %cst_6 : f32 to vector<32x32xf32>
    %14 = arith.select %12, %4, %13 : vector<32x32xi1>, vector<32x32xf32>
    %cst_7 = arith.constant dense<0xFF800000> : vector<32xf32>
    %15 = vector.multi_reduction <maximumf>, %3, %cst_7 [1] : vector<32x32xf32> to vector<32xf32>
    %16 = vector.shape_cast %15 : vector<32xf32> to vector<32x1xf32>
    %17 = vector.broadcast %16 : vector<32x1xf32> to vector<32x32xf32>
    %18 = arith.subf %3, %17 : vector<32x32xf32>
    %19 = math.exp %18 : vector<32x32xf32>
    %20 = vector.extract_strided_slice %19 {offsets = [0, 0], sizes = [32, 1], strides = [1, 1]} : vector<32x32xf32> to vector<32x1xf32>
    %cst_8 = arith.constant 0.000000e+00 : f32
    %21 = vector.broadcast %cst_8 : f32 to vector<32x32xf32>
    %22 = arith.select %12, %19, %21 : vector<32x32xi1>, vector<32x32xf32>
    %cst_9 = arith.constant dense<0.000000e+00> : vector<32xf32>
    %23 = vector.multi_reduction <add>, %22, %cst_9 [1] : vector<32x32xf32> to vector<32xf32>
    %24 = vector.shape_cast %23 : vector<32xf32> to vector<32x1xf32>
    %cst_10 = arith.constant 0.000000e+00 : f32
    %25 = vector.broadcast %cst_10 : f32 to vector<32x32xf32>
    %26 = arith.select %12, %25, %19 : vector<32x32xi1>, vector<32x32xf32>
    %cst_11 = arith.constant dense<0.000000e+00> : vector<32xf32>
    %27 = vector.multi_reduction <add>, %26, %cst_11 [1] : vector<32x32xf32> to vector<32xf32>
    %28 = vector.shape_cast %27 : vector<32xf32> to vector<32x1xf32>
    %29 = arith.addf %24, %20 : vector<32x1xf32>
    %cst_12 = arith.constant 1.000000e-30 : f32
    %30 = vector.broadcast %cst_12 : f32 to vector<32x1xf32>
    %31 = arith.maximumf %29, %30 : vector<32x1xf32>
    %32 = math.log %31 : vector<32x1xf32>
    %33 = arith.addf %16, %32 : vector<32x1xf32>
    %cst_13 = arith.constant 1.000000e-30 : f32
    %34 = vector.broadcast %cst_13 : f32 to vector<32x1xf32>
    %35 = arith.maximumf %28, %34 : vector<32x1xf32>
    %36 = math.log %35 : vector<32x1xf32>
    %37 = arith.addf %16, %36 : vector<32x1xf32>
    %38 = vector.broadcast %33 : vector<32x1xf32> to vector<32x32xf32>
    %39 = arith.subf %38, %3 : vector<32x32xf32>
    %40 = arith.mulf %14, %39 : vector<32x32xf32>
    %cst_14 = arith.constant dense<0.000000e+00> : vector<32xf32>
    %41 = vector.multi_reduction <add>, %40, %cst_14 [1] : vector<32x32xf32> to vector<32xf32>
    %42 = vector.shape_cast %41 : vector<32xf32> to vector<32x1xf32>
    %43 = vector.extract_strided_slice %3 {offsets = [0, 0], sizes = [32, 1], strides = [1, 1]} : vector<32x32xf32> to vector<32x1xf32>
    %44 = arith.subf %37, %43 : vector<32x1xf32>
    %c3_i32 = arith.constant 3 : i32
    %45 = arith.muli %arg0, %c3_i32 : i32
    %46 = arith.addi %45, %arg1 : i32
    %47 = tpu.iota {dimensions = array<i32: 0>} : vector<32x1xi32>
    %c32_i32 = arith.constant 32 : i32
    %48 = arith.muli %46, %c32_i32 : i32
    %49 = vector.broadcast %48 : i32 to vector<32x1xi32>
    %50 = arith.addi %47, %49 : vector<32x1xi32>
    %c72_i32 = arith.constant 72 : i32
    %51 = vector.broadcast %c72_i32 : i32 to vector<32x1xi32>
    %52 = arith.cmpi slt, %50, %51 : vector<32x1xi32>
    %53 = arith.addf %42, %44 : vector<32x1xf32>
    %cst_15 = arith.constant 0.000000e+00 : f32
    %54 = vector.broadcast %cst_15 : f32 to vector<32x1xf32>
    %55 = arith.select %52, %53, %54 : vector<32x1xi1>, vector<32x1xf32>
    %c0_16 = arith.constant 0 : index
    %c0_17 = arith.constant 0 : index
    %56 = vector.load %arg5[%c0_16, %c0_17] : memref<32x1xf32, #tpu.memory_space<vmem>>, vector<32x1xf32>
    %57 = arith.addf %56, %55 : vector<32x1xf32>
    %c0_18 = arith.constant 0 : index
    %c0_19 = arith.constant 0 : index
    %58 = vector.load %arg5[%c0_18, %c0_19] : memref<32x1xf32, #tpu.memory_space<vmem>>, vector<32x1xf32>
    tpu.vector_store %arg5[%c0_18, %c0_19], %57 {strides = array<i32>} : memref<32x1xf32, #tpu.memory_space<vmem>>, vector<32x1xf32>,
    %c2_i32 = arith.constant 2 : i32
    %59 = arith.cmpi eq, %arg1, %c2_i32 : i32
    %60 = arith.extui %59 : i1 to i32
    %c0_i32_20 = arith.constant 0 : i32
    %61 = arith.cmpi ne, %60, %c0_i32_20 : i32
    scf.if %61 {
      %c0_21 = arith.constant 0 : index
      %c0_22 = arith.constant 0 : index
      %62 = vector.load %arg5[%c0_21, %c0_22] : memref<32x1xf32, #tpu.memory_space<vmem>>, vector<32x1xf32>
      %cst_23 = arith.constant dense<0.000000e+00> : vector<1xf32>
      %63 = vector.multi_reduction <add>, %62, %cst_23 [0] : vector<32x1xf32> to vector<1xf32>
      %64 = vector.shape_cast %63 : vector<1xf32> to vector<1x1xf32>
      %c0_24 = arith.constant 0 : index
      %c0_25 = arith.constant 0 : index
      %65 = vector.load %arg4[%c0_24, %c0_25] : memref<1x1xf32, #tpu.memory_space<vmem>>, vector<1x1xf32>
      tpu.vector_store %arg4[%c0_24, %c0_25], %64 {strides = array<i32>} : memref<1x1xf32, #tpu.memory_space<vmem>>, vector<1x1xf32>,
    } else {
    }
    return
  }
  func.func @transform_0(%arg0: i32, %arg1: i32) -> (i32, i32) {
    %c3_i32 = arith.constant 3 : i32
    %0 = arith.muli %arg0, %c3_i32 : i32
    %1 = arith.addi %0, %arg1 : i32
    %c2_i32 = arith.constant 2 : i32
    %2 = arith.minsi %1, %c2_i32 : i32
    %c0_i32 = arith.constant 0 : i32
    %c0_i32_0 = arith.constant 0 : i32
    return %2, %c0_i32 : i32, i32
  }
  func.func @transform_1(%arg0: i32, %arg1: i32) -> (i32, i32) {
    %c3_i32 = arith.constant 3 : i32
    %0 = arith.muli %arg0, %c3_i32 : i32
    %1 = arith.addi %0, %arg1 : i32
    %c2_i32 = arith.constant 2 : i32
    %2 = arith.minsi %1, %c2_i32 : i32
    %c0_i32 = arith.constant 0 : i32
    %c0_i32_0 = arith.constant 0 : i32
    return %2, %c0_i32 : i32, i32
  }
  func.func @transform_2(%arg0: i32, %arg1: i32) -> (i32, i32) {
    %c0_i32 = arith.constant 0 : i32
    %c0_i32_0 = arith.constant 0 : i32
    return %arg0, %c0_i32 : i32, i32
  }
}

</mosaic_0001>

<bundles_post_ra>
// kernel: tpu_custom_call.1
= control target key start
LH: loop header
LB: loop body
LE: loop exit
PB: predicated region body
PF: predicated region fallthrough
CT: control target
= control target key end

     0   :  { %7 = vsyncpa [#allocation4], 0  ;;  %s719_s9 = smov 0   ;;  %s721_s10 = smov 0   ;;  %s932_s0 = inlined_call_operand.vmem [shape: f32[72,32], index: 0, kind: input, shape index: {}]   ;;  %s933_s1 = inlined_call_operand.vmem [shape: f32[72,32], index: 1, kind: input, shape index: {}]   ;;  %s934_s2 = inlined_call_operand.hbm [shape: f32[1,1], index: 2, kind: output, shape index: {}]  }
   0x1   :  { %s723_s11 = smov 0  }
   0x2 LB: > { %s571_s12 = sadd.s32 4294967295, %s698_s11   ;;  %s22_s13 = sadd.s32 1, %s694_s10  ;;  %s698_s11 = sphi %s723_s11, %s13_s11   ;;  %s694_s10 = sphi %s721_s10, %s947_s10   ;;  %s690_s9 = sphi %s719_s9, %s946_s9  }
   0x3   : > { %p23_p0 = scmp.ge.s32.totalorder %s22_s13, 3  ;;  %p574_p1 = scmp.ge.s32.totalorder %s698_s11, 1 }
   0x4   : > { %p185_p2 = scmp.lt.s32.totalorder %s698_s11, 4 }
   0x5   : > { %s949_s13 = smov (%p23_p0, %s22_s13), 0 }
   0x6   : > { %p186_p3 = pnand %p574_p1, %p185_p2 }
   0x7   : > { %p225_p4 = scmp.lt.s32.totalorder (!%p186_p3), %s690_s9, 2  ;;  %p579_p6 = scmp.ne.s32.totalorder (!%p186_p3), %s690_s9, 0 }
   0x8   : > { %189 = sbr.rel (%p186_p3) target bundleno = 686 (0x2ae), region = 28 }
   0xf   : > { %s226_s14 = scalar_select %p225_p4, %s690_s9, 2 }
  0x10   : > { %270 = sbr.rel (%p579_p6) target bundleno = 23 (0x17), region = 32  ;;  %vm271_vm0 = vcmask (!%p579_p6), 7168   ;;  %v700_v0 = vmov (!%p579_p6), 0.0  }
  0x11   : > { %s575_s15 = sshll.u32 %s226_s14, 2  ;;  %272 = vst.msk [vmem:[#allocation2] sm:$0xff] (!%p579_p6), %vm271_vm0, %v700_v0  ;;  %273 = vst.msk [vmem:[#allocation2 + $0x8] sm:$0xff] (!%p579_p6), %vm271_vm0, %v700_v0 }
  0x12   : > { %p232_p5 = scmp.lt.s32.totalorder %s575_s15, 8  ;;  %274 = vst.msk [vmem:[#allocation2 + $0x10] sm:$0xff] (!%p579_p6), %vm271_vm0, %v700_v0  ;;  %275 = vst.msk [vmem:[#allocation2 + $0x18] sm:$0xff] (!%p579_p6), %vm271_vm0, %v700_v0 }
  0x14   : > { %s951_s15 = smov (!%p232_p5, %s575_s15), 8 }
  0x15   : > { %s576_s16 = sshll.u32 %s951_s15, 3 }
  0x16   : > { %s235_s19 = scalar_lea.vmem %s932_s0, %s576_s16  ;;  %s748_s22 = scalar_lea.vmem %s933_s1, %s576_s16 }
  0x17 PF: > { %v751_v1 = vld [vmem:[%s235_s19] sm:$0xff]  ;;  %vm302_vm1 = vcmask 261120   ;;  %v753_v2 = vld [vmem:[%s235_s19 + $0x10] sm:$0xff]  ;;  %v755_v3 = vld [vmem:[%s235_s19 + $0x8] sm:$0xff]  ;;  %v284_v9 = vlaneseq  ;;  %vm701_vm4 = vmmov 1   ;;  %v702_v44 = vmov 0  }
  0x18   : > { %v303_v4 = vsel %vm302_vm1, %v751_v1, -inf  ;;  %v309_v5 = vsel %vm302_vm1, %v753_v2, -inf  ;;  %v761_v6 = vld [vmem:[%s235_s19 + $0x18] sm:$0xff]  ;;  %v306_v7 = vsel %vm302_vm1, %v755_v3, -inf  ;;  %v785_v21 = vld [vmem:[%s748_s22] sm:$0xff]  ;;  %v788_v24 = vld [vmem:[%s748_s22 + $0x10] sm:$0xff]  ;;  %620 = vset.pattern.permute.xlu0 %v702_v44  ;;  %621 = vset.pattern.permute.xlu1 %v702_v44 }
  0x19   : > { %304 = vmax.xlane.f32.xlu0 %v303_v4  ;;  %310 = vmax.xlane.f32.xlu1 %v309_v5  ;;  %v312_v8 = vsel %vm302_vm1, %v761_v6, -inf  ;;  %v285_v16 = vand.u32 127, %v284_v9  ;;  %vm287_vm3 = vcmp.ne.f32.partialorder %v785_v21, 0.0  ;;  %vm289_vm6 = vcmp.ne.f32.partialorder %v788_v24, 0.0  ;;  %v797_v26 = vld [vmem:[%s748_s22 + $0x8] sm:$0xff]  ;;  %v800_v27 = vld [vmem:[%s748_s22 + $0x18] sm:$0xff] }
  0x1a   : > { %vm288_vm9 = vcmp.ne.f32.partialorder %v797_v26, 0.0  ;;  %vm290_vm10 = vcmp.ne.f32.partialorder %v800_v27, 0.0  ;;  %s580_s23 = sshll.u32 %s690_s9, 5  ;;  %vm472_vm14 = vcmask 7168   ;;  %p581_p7 = scmp.ne.s32.totalorder %s690_s9, 2 }
  0x1b   : > { %vm286_vm2 = vcmp.eq.s32.totalorder %v285_v16, 0 }
  0x1c   : > { %vm791_vm5 = vmxor %vm286_vm2, %vm701_vm4  ;;  %vm498_vm2 = vcmask (!%p581_p7), 0  }
  0x1d   : > { %307 = vmax.xlane.f32.xlu0 %v306_v7  ;;  %313 = vmax.xlane.f32.xlu1 %v312_v8  ;;  %vm804_vm7 = vmand %vm287_vm3, %vm791_vm5 }
  0x1e   : > { %vm810_vm8 = vmand %vm289_vm6, %vm791_vm5  ;;  %v298_v25 = vsel %vm804_vm7, %v785_v21, 0.0 }
  0x1f   : > { %vm823_vm11 = vmand %vm288_vm9, %vm791_vm5  ;;  %v300_v28 = vsel %vm810_vm8, %v788_v24, 0.0 }
  0x20   : > { %vm829_vm12 = vmand %vm290_vm10, %vm791_vm5 }
  0xa6   : > { %v767_v10 = vpop.xlane.xlu0 %304  ;;  %v769_v11 = vpop.xlane.xlu1 %310 }
  0xa7   : > { %v315_v12 = vsub.f32 %v751_v1, %v767_v10  ;;  %v317_v13 = vsub.f32 %v753_v2, %v769_v11 }
  0xa9   : > { %v319_v14 = vmul.f32 1.442695, %v315_v12  ;;  %v323_v15 = vmul.f32 1.442695, %v317_v13 }
  0xaa   : > { %v776_v17 = vpop.xlane.xlu0 %307  ;;  %v778_v18 = vpop.xlane.xlu1 %313 }
  0xab   : > { %622 = vpow2.f32 %v319_v14  ;;  %v316_v19 = vsub.f32 %v755_v3, %v776_v17  ;;  %v318_v20 = vsub.f32 %v761_v6, %v778_v18 }
  0xac   : > { %624 = vpow2.f32 %v323_v15 }
  0xad   : > { %v321_v22 = vmul.f32 1.442695, %v316_v19  ;;  %v325_v23 = vmul.f32 1.442695, %v318_v20 }
  0xaf   : > { %626 = vpow2.f32 %v321_v22 }
  0xb0   : > { %628 = vpow2.f32 %v325_v23 }
  0xb5   : > { %v623_v30 = vpop.eup %622 }
  0xb6   : > { %v625_v31 = vpop.eup %624  ;;  %v327_v32 = vsel %vm804_vm7, %v623_v30, 0.0  ;;  %v343_v14 = vsel %vm804_vm7, 0.0, %v623_v30 }
  0xb7   : > { %v331_v33 = vsel %vm302_vm1, %v327_v32, 0.0  ;;  %v329_v34 = vsel %vm810_vm8, %v625_v31, 0.0  ;;  %v347_v15 = vsel %vm302_vm1, %v343_v14, 0.0  ;;  %v345_v16 = vsel %vm810_vm8, 0.0, %v625_v31 }
  0xb8   : > { %332 = vadd.xlane.f32.xlu0 %v331_v33  ;;  %v337_v38 = vsel %vm302_vm1, %v329_v34, 0.0  ;;  %v353_v19 = vsel %vm302_vm1, %v345_v16, 0.0 }
  0xb9   : > { %v627_v37 = vpop.eup %626 }
  0xba   : > { %v629_v39 = vpop.eup %628  ;;  %v328_v40 = vsel %vm823_vm11, %v627_v37, 0.0  ;;  %v344_v12 = vsel %vm823_vm11, 0.0, %v627_v37 }
  0xbb   : > { %v334_v41 = vsel %vm302_vm1, %v328_v40, 0.0  ;;  %v330_v42 = vsel %vm829_vm12, %v629_v39, 0.0  ;;  %v350_v13 = vsel %vm302_vm1, %v344_v12, 0.0  ;;  %v346_v20 = vsel %vm829_vm12, 0.0, %v629_v39 }
  0xbc   : > { %338 = vadd.xlane.f32.xlu0 %v337_v38  ;;  %335 = vadd.xlane.f32.xlu1 %v334_v41  ;;  %v340_v43 = vsel %vm302_vm1, %v330_v42, 0.0  ;;  %v356_v22 = vsel %vm302_vm1, %v346_v20, 0.0 }
  0xc0   : > { %341 = vadd.xlane.f32.xlu1 %v340_v43 }
 0x145   : > { %v333_v45 = vpop.xlane.xlu0 %332 }
 0x146   : > { %v359_v46 = vadd.f32 %v623_v30, %v333_v45 }
 0x148   : > { %v363_v47 = vmax.f32 %v359_v46, 1e-30 }
 0x149   : > { %v336_v48 = vpop.xlane.xlu1 %335  ;;  %v339_v49 = vpop.xlane.xlu0 %338 }
 0x14a   : > { %630 = vlog2.f32 %v363_v47  ;;  %v360_v50 = vadd.f32 %v627_v37, %v336_v48  ;;  %v361_v51 = vadd.f32 %v625_v31, %v339_v49  ;;  %v299_v31 = vsel %vm823_vm11, %v797_v26, 0.0 }
 0x14b   : > { %v301_v26 = vsel %vm829_vm12, %v800_v27, 0.0 }
 0x14c   : > { %v364_v52 = vmax.f32 %v360_v50, 1e-30  ;;  %v365_v53 = vmax.f32 %v361_v51, 1e-30 }
 0x14d   : > { %v342_v54 = vpop.xlane.xlu1 %341 }
 0x14e   : > { %632 = vlog2.f32 %v364_v52  ;;  %v362_v55 = vadd.f32 %v629_v39, %v342_v54  ;;  %v447_v54 = vstv %s580_s23 }
 0x14f   : > { %634 = vlog2.f32 %v365_v53  ;;  %v442_v53 = vshrl.u32 %v284_v9, 7 }
 0x150   : > { %v366_v56 = vmax.f32 %v362_v55, 1e-30 }
 0x151   : > { %v445_v16 = vadd.s32 24, %v442_v53 }
 0x152   : > { %636 = vlog2.f32 %v366_v56 }
 0x154   : > { %v631_v57 = vpop.eup %630 }
 0x155   : > { %v368_v58 = vmul.f32 0.6931472, %v631_v57 }
 0x157   : > { %v375_v59 = vadd.f32 %v368_v58, %v767_v10  ;;  %v448_v58 = vadd.s32 %v447_v54, %v442_v53 }
 0x158   : > { %v633_v60 = vpop.eup %632 }
 0x159   : > { %v635_v61 = vpop.eup %634  ;;  %v370_v62 = vmul.f32 0.6931472, %v633_v60  ;;  %397 = vperm.xlu0 %620, %v375_v59   ;;  %v443_v59 = vadd.s32 8, %v442_v53  ;;  %vm452_vm13 = vcmp.lt.s32.totalorder %v448_v58, 72 }
 0x15a   : > { %v372_v63 = vmul.f32 0.6931472, %v635_v61 }
 0x15b   : > { %v376_v0 = vadd.f32 %v370_v62, %v776_v17 }
 0x15c   : > { %v637_v4 = vpop.eup %636  ;;  %v377_v7 = vadd.f32 %v372_v63, %v769_v11 }
 0x15d   : > { %402 = vperm.xlu1 %621, %v376_v0   ;;  %v374_v5 = vmul.f32 0.6931472, %v637_v4  ;;  %v449_v4 = vadd.s32 %v447_v54, %v443_v59 }
 0x15f   : > { %v378_v8 = vadd.f32 %v374_v5, %v778_v18  ;;  %v444_v5 = vadd.s32 16, %v442_v53  ;;  %vm453_vm15 = vcmp.lt.s32.totalorder %v449_v4, 72 }
 0x161   : > { %407 = vperm.xlu1 %621, %v377_v7   ;;  %v464_v7 = vld [vmem:[#allocation2] sm:$0xff] }
 0x165   : > { %412 = vperm.xlu1 %621, %v378_v8  }
 0x178   : > { %351 = vadd.xlane.f32.xlu0 %v350_v13 }
 0x189   : > { %348 = vadd.xlane.f32.xlu1 %v347_v15 }
 0x18d   : > { %354 = vadd.xlane.f32.xlu1 %v353_v19 }
 0x191   : > { %357 = vadd.xlane.f32.xlu1 %v356_v22 }
 0x1d8   : > { %v398_v23 = vpop.permute.xlu0 %397 }
 0x1d9   : > { %v415_v30 = vsub.f32 %v398_v23, %v751_v1 }
 0x1db   : > { %v419_v32 = vmul.f32 %v415_v30, %v298_v25 }
 0x1dc   : > { %v403_v33 = vpop.permute.xlu1 %402 }
 0x1dd   : > { %v416_v34 = vsub.f32 %v403_v33, %v755_v3  ;;  %v423_v37 = vsel %vm302_vm1, %v419_v32, 0.0  ;;  %v466_v32 = vld [vmem:[#allocation2 + $0x10] sm:$0xff] }
 0x1de   : > { %424 = vadd.xlane.f32.xlu1 %v423_v37 }
 0x1df   : > { %v420_v38 = vmul.f32 %v416_v34, %v299_v31 }
 0x1e0   : > { %v408_v39 = vpop.permute.xlu1 %407 }
 0x1e1   : > { %v417_v21 = vsub.f32 %v408_v39, %v753_v2  ;;  %v426_v40 = vsel %vm302_vm1, %v420_v38, 0.0  ;;  %v467_v38 = vld [vmem:[#allocation2 + $0x18] sm:$0xff] }
 0x1e2   : > { %427 = vadd.xlane.f32.xlu1 %v426_v40 }
 0x1e3   : > { %v421_v41 = vmul.f32 %v417_v21, %v300_v28 }
 0x1e4   : > { %v413_v42 = vpop.permute.xlu1 %412 }
 0x1e5   : > { %v418_v35 = vsub.f32 %v413_v42, %v761_v6  ;;  %v429_v43 = vsel %vm302_vm1, %v421_v41, 0.0 }
 0x1e6   : > { %430 = vadd.xlane.f32.xlu0 %v429_v43 }
 0x1e7   : > { %v422_v44 = vmul.f32 %v418_v35, %v301_v26 }
 0x1e9   : > { %v432_v24 = vsel %vm302_vm1, %v422_v44, 0.0 }
 0x1ea   : > { %433 = vadd.xlane.f32.xlu1 %v432_v24 }
 0x205   : > { %v352_v46 = vpop.xlane.xlu0 %351 }
 0x206   : > { %v380_v48 = vmax.f32 %v352_v46, 1e-30 }
 0x216   : > { %v349_v29 = vpop.xlane.xlu1 %348 }
 0x217   : > { %v379_v45 = vmax.f32 %v349_v29, 1e-30 }
 0x219   : > { %638 = vlog2.f32 %v379_v45 }
 0x21a   : > { %v355_v47 = vpop.xlane.xlu1 %354  ;;  %640 = vlog2.f32 %v380_v48 }
 0x21b   : > { %v381_v49 = vmax.f32 %v355_v47, 1e-30 }
 0x21d   : > { %642 = vlog2.f32 %v381_v49 }
 0x21e   : > { %v358_v36 = vpop.xlane.xlu1 %357 }
 0x21f   : > { %v382_v27 = vmax.f32 %v358_v36, 1e-30 }
 0x221   : > { %644 = vlog2.f32 %v382_v27 }
 0x223   : > { %v639_v50 = vpop.eup %638 }
 0x224   : > { %v384_v51 = vmul.f32 0.6931472, %v639_v50  ;;  %v641_v52 = vpop.eup %640 }
 0x225   : > { %v386_v55 = vmul.f32 0.6931472, %v641_v52 }
 0x226   : > { %v391_v56 = vadd.f32 %v384_v51, %v767_v10 }
 0x227   : > { %v643_v57 = vpop.eup %642  ;;  %v392_v62 = vadd.f32 %v386_v55, %v776_v17  ;;  %v465_v17 = vld [vmem:[#allocation2 + $0x8] sm:$0xff] }
 0x228   : > { %v388_v60 = vmul.f32 0.6931472, %v643_v57  ;;  %v435_v61 = vsub.f32 %v391_v56, %v751_v1  ;;  %v450_v1 = vadd.s32 %v447_v54, %v444_v5 }
 0x229   : > { %v436_v10 = vsub.f32 %v392_v62, %v755_v3  ;;  %v451_v3 = vadd.s32 %v447_v54, %v445_v16 }
 0x22a   : > { %v393_v13 = vadd.f32 %v388_v60, %v769_v11  ;;  %vm454_vm0 = vcmp.lt.s32.totalorder %v450_v1, 72 }
 0x22b   : > { %v645_v63 = vpop.eup %644  ;;  %vm455_vm1 = vcmp.lt.s32.totalorder %v451_v3, 72 }
 0x22c   : > { %v390_v9 = vmul.f32 0.6931472, %v645_v63  ;;  %v437_v22 = vsub.f32 %v393_v13, %v753_v2 }
 0x22e   : > { %v394_v23 = vadd.f32 %v390_v9, %v778_v18 }
 0x230   : > { %v438_v31 = vsub.f32 %v394_v23, %v761_v6 }
 0x26b   : > { %v425_v0 = vpop.xlane.xlu1 %424 }
 0x26c   : > { %v456_v8 = vadd.f32 %v435_v61, %v425_v0 }
 0x26e   : > { %v460_v12 = vsel %vm452_vm13, %v456_v8, 0.0 }
 0x26f   : > { %v468_v14 = vadd.f32 %v464_v7, %v460_v12  ;;  %v428_v15 = vpop.xlane.xlu1 %427 }
 0x270   : > { %v457_v19 = vadd.f32 %v436_v10, %v428_v15 }
 0x271   : > { %473 = vst.msk [vmem:[#allocation2] sm:$0xff] %vm472_vm14, %v468_v14 }
 0x272   : > { %v461_v20 = vsel %vm453_vm15, %v457_v19, 0.0 }
 0x273   : > { %v469_v25 = vadd.f32 %v465_v17, %v461_v20  ;;  %v431_v30 = vpop.xlane.xlu0 %430 }
 0x274   : > { %v458_v11 = vadd.f32 %v437_v22, %v431_v30 }
 0x275   : > { %474 = vst.msk [vmem:[#allocation2 + $0x8] sm:$0xff] %vm472_vm14, %v469_v25 }
 0x276   : > { %v462_v33 = vsel %vm454_vm0, %v458_v11, 0.0 }
 0x277   : > { %v470_v34 = vadd.f32 %v466_v32, %v462_v33  ;;  %v434_v37 = vpop.xlane.xlu1 %433  ;;  %480 = sbr.rel (%p581_p7) target bundleno = 661 (0x295), region = 36 }
 0x278   : > { %v459_v39 = vadd.f32 %v438_v31, %v434_v37  ;;  %v481_v28 = vld [vmem:[#allocation2] sm:$0xff] (!%p581_p7) }
 0x279   : > { %475 = vst.msk [vmem:[#allocation2 + $0x10] sm:$0xff] %vm472_vm14, %v470_v34  ;;  %v485_v6 = vsel (!%p581_p7), %vm472_vm14, %v481_v28, 0.0 }
 0x27a   : > { %v463_v2 = vsel %vm455_vm1, %v459_v39, 0.0 }
 0x27b   : > { %v471_v18 = vadd.f32 %v467_v38, %v463_v2 }
 0x27c   : > { %v482_v21 = vld [vmem:[#allocation2 + $0x8] sm:$0xff] (!%p581_p7) }
 0x27d   : > { %476 = vst.msk [vmem:[#allocation2 + $0x18] sm:$0xff] %vm472_vm14, %v471_v18  ;;  %v486_v42 = vsel (!%p581_p7), %vm472_vm14, %v482_v21, 0.0 }
 0x27e   : > { %v487_v35 = vadd.f32 %v486_v42, %v485_v6 }
 0x280   : > { %v483_v40 = vld [vmem:[#allocation2 + $0x10] sm:$0xff] }
 0x281   : > { %v488_v26 = vsel %vm472_vm14, %v483_v40, 0.0 }
 0x282   : > { %v489_v44 = vadd.f32 %v488_v26, %v487_v35 }
 0x284   : > { %v484_v41 = vld [vmem:[#allocation2 + $0x18] sm:$0xff] }
 0x285   : > { %v490_v43 = vsel %vm472_vm14, %v484_v41, 0.0 }
 0x286   : > { %v491_v24 = vadd.f32 %v490_v43, %v489_v44 }
 0x288   : > { %v492_v29 = vrot.slane %v491_v24, 4 }
 0x28a   : > { %v493_v45 = vadd.f32 %v492_v29, %v491_v24 }
 0x28c   : > { %v494_v46 = vrot.slane %v493_v45, 2 }
 0x28e   : > { %v495_v47 = vadd.f32 %v494_v46, %v493_v45 }
 0x290   : > { %v496_v48 = vrot.slane %v495_v47, 1 }
 0x292   : > { %v497_v49 = vadd.f32 %v496_v48, %v495_v47 }
 0x294   : > { %499 = vst.msk [vmem:[#allocation3] sm:$0x1] %vm498_vm2, %v497_v49 }
 0x295 PF: > { %p897_p8 = scmp.eq.s32.totalorder %s571_s12, 2  ;;  %s703_s25 = smov [#allocation3]  }
 0x296   : > { %s509_s26 = sshll.u32 %s703_s25, 4  ;;  %s510_s26 = int_to_ptr.vmem [resolvable:$true] %s509_s26 }
 0x297   : > { %s646_s27 = scalar_lea.vmem %s510_s26, 16  ;;  %s652_s28 = scalar_lea.vmem %s510_s26, 32 }
 0x298   : > { %p647_p9 = scmp.ne.s32.totalorder %s510_s26, %s646_s27  ;;  %p653_p12 = scmp.lt.s32.totalorder %s510_s26, %s510_s26 }
 0x299   : > { %p654_p13 = scmp.lt.s32.totalorder %s652_s28, %s646_s27 }
 0x29a   : > { %p648_p10 = pnand %p647_p9, %p897_p8 }
 0x29b   : > { %p655_p0 = por %p654_p13, %p653_p12 }
 0x29c   : > { %p649_p11 = pneg %p648_p10 }
 0x29e   : > { %p656_p1 = pnand %p655_p0, %p649_p11 }
 0x2a0   : > { %659 = shalt.err (!%p656_p1)
}
 0x2a1   : > { %s660_s3 = scalar_lea.hbm %s934_s2, 16 }
 0x2a2   : > { %p661_p2 = scmp.ne.s32.totalorder %s934_s2, %s660_s3  ;;  %p666_p5 = scmp.lt.u32.totalorder %s660_s3, %s934_s2 }
 0x2a4   : > { %p662_p3 = pnand %p661_p2, %p897_p8 }
 0x2a6   : > { %p663_p4 = pneg %p662_p3 }
 0x2a8   : > { %p668_p6 = pnand %p666_p5, %p663_p4 }
 0x2aa   : > { %671 = shalt.err (!%p668_p6)
}
 0x2ab   : > { %587 = dma.vmem_to_hbm [thread:$0]  (%p897_p8), %s510_s26, 16, %s934_s2, [#allocation4]  }
 0x2ac   : > { %685 = dma.done.wait (%p897_p8), [#allocation4], 16  }
 0x2ad   : > { %687 = vsyncadd (%p897_p8), [#allocation4], 4294967280 }
 0x2ae PF: > { %s13_s11 = sadd.s32 1, %s698_s11   ;;  %s946_s9 = smov %s694_s10 }
 0x2af   : > { %p10_p7 = scmp.ge.s32.totalorder %s13_s11, 5   ;;  %s947_s10 = smov %s949_s13 }
 0x2b1   :  { %12 = sbr.rel (!%p10_p7) target bundleno = 2 (0x2), region = 67 }
 0x2b8   :  { %522 = vsyncpa [#allocation4], 1 }
 0x2b9   :  { %524 = vsyncpa [#allocation4 + $0x1], 1 }

</bundles_post_ra>
